<compile_context>
chip_gen: v5e
topology: v5e:2x2
jax: 0.10.0
libtpu: 0.0.40
codegen_flags: <defaults>
</compile_context>

<pallas_src>
import functools
import math

import jax
import jax.numpy as jnp
from jax import lax
from jax.experimental import pallas as pl
from jax.experimental.pallas import tpu as pltpu

# Make both the kernel-traced dots and the XLA reference use full-precision
# matmuls so the correctness check is not dominated by bf16-pass rounding.
jax.config.update("jax_default_matmul_precision", "highest")


def _pick_tile(dim, candidates):
    """Largest candidate tile that evenly divides `dim`, else the full dim."""
    for c in candidates:
        if c <= dim and dim % c == 0:
            return c
    return dim


# --------------------------------------------------------------------------
# Tiled / pipelined linear:  out = x @ w^T + b     (w in PyTorch (N, K) layout)
# --------------------------------------------------------------------------
def linear_kernel(x_ref, w_ref, b_ref, o_ref, acc_ref):
    @pl.when(pl.program_id(2) == 0)
    def _init():
        acc_ref[...] = jnp.zeros_like(acc_ref[...])

    # Contract K with K: x (tm, tk) @ w (tn, tk)^T -> (tm, tn), f32 acc on MXU.
    acc_ref[...] += lax.dot_general(
        x_ref[...], w_ref[...],
        dimension_numbers=(((1,), (1,)), ((), ())),
        preferred_element_type=jnp.float32)

    @pl.when(pl.program_id(2) == pl.num_programs(2) - 1)
    def _finalize():
        o_ref[...] = (acc_ref[...] + b_ref[...].astype(jnp.float32)).astype(o_ref.dtype)


def linear(x, w, b):
    """x: (M, K); w: (N, K) PyTorch nn.Linear layout (NOT transposed); b: (N,)."""
    M, K = x.shape
    N, K2 = w.shape
    assert K == K2
    tm = _pick_tile(M, (512, 256, 128))
    tn = _pick_tile(N, (512, 256, 128))
    tk = _pick_tile(K, (1024, 512, 256, 128))
    b2 = b.reshape(1, N)
    return pl.pallas_call(
        linear_kernel,
        out_shape=jax.ShapeDtypeStruct((M, N), x.dtype),
        grid=(M // tm, N // tn, K // tk),
        in_specs=[
            pl.BlockSpec((tm, tk), lambda i, j, k: (i, k)),
            pl.BlockSpec((tn, tk), lambda i, j, k: (j, k)),
            pl.BlockSpec((1, tn), lambda i, j, k: (0, j)),
        ],
        out_specs=pl.BlockSpec((tm, tn), lambda i, j, k: (i, j)),
        scratch_shapes=[pltpu.VMEM((tm, tn), jnp.float32)],
        compiler_params=pltpu.CompilerParams(
            dimension_semantics=("parallel", "parallel", "arbitrary")),
    )(x, w, b2)


# --------------------------------------------------------------------------
# Flash-style causal attention with GQA head folding (one KV group per step)
# --------------------------------------------------------------------------
def flash_kernel(q_ref, k_ref, v_ref, o_ref, m_sc, l_sc, acc_sc,
                 *, scale, tq, tk, q_per_kv, hs):
    qi = pl.program_id(1)
    ki = pl.program_id(2)
    F = q_per_kv * tq  # folded rows: all query heads of this KV group

    @pl.when(ki == 0)
    def _init():
        m_sc[...] = jnp.full_like(m_sc[...], -jnp.inf)
        l_sc[...] = jnp.zeros_like(l_sc[...])
        acc_sc[...] = jnp.zeros_like(acc_sc[...])

    q_first = qi * tq
    q_last = q_first + (tq - 1)
    k_first = ki * tk
    k_last = k_first + (tk - 1)

    def scores():
        # Model-dtype tiles straight into the MXU (no f32 upcast of q/k);
        # scale is applied once to the f32 score tile.
        q = q_ref[0].reshape(F, hs)                         # (F, hs)
        k = k_ref[0]                                        # (tk, hs)
        s = lax.dot_general(q, k, (((1,), (1,)), ((), ())),
                            preferred_element_type=jnp.float32)
        return s * scale                                    # (F, tk) f32

    def accumulate(s):
        m_prev = m_sc[...]
        m_new = jnp.maximum(m_prev, jnp.max(s, axis=-1, keepdims=True))
        alpha = jnp.exp(m_prev - m_new)
        p = jnp.exp(s - m_new)
        l_sc[...] = alpha * l_sc[...] + jnp.sum(p, axis=-1, keepdims=True)
        acc_sc[...] = alpha * acc_sc[...] + jnp.dot(
            p.astype(v_ref.dtype), v_ref[0],
            preferred_element_type=jnp.float32)
        m_sc[...] = m_new

    # kv block fully at/below the causal diagonal: no masking needed.
    @pl.when(k_last <= q_first)
    def _interior():
        accumulate(scores())

    # kv block straddling the diagonal: apply the causal mask.
    @pl.when(jnp.logical_and(k_last > q_first, k_first <= q_last))
    def _diagonal():
        s = scores()
        row = q_first + (lax.broadcasted_iota(jnp.int32, (F, tk), 0) % tq)
        col = k_first + lax.broadcasted_iota(jnp.int32, (F, tk), 1)
        accumulate(jnp.where(row >= col, s, -jnp.inf))

    # kv blocks fully above the diagonal (k_first > q_last): compute skipped;
    # their K/V DMA is also skipped via the clamped index_map in flash_attention.

    @pl.when(ki == pl.num_programs(2) - 1)
    def _finalize():
        out = acc_sc[...] / l_sc[...]        # exact division; runs once per q block
        o_ref[0] = out.reshape(q_per_kv, tq, hs).astype(o_ref.dtype)


def flash_attention(q, k, v):
    """q: (B*G, q_per_kv, T, hs);  k, v: (B*G, T, hs) un-expanded GQA KV.

    Returns (B*G, q_per_kv, T, hs).
    """
    BG, q_per_kv, T, hs = q.shape
    scale = 1.0 / math.sqrt(hs)
    # Cap the folded row count so acc/q tiles stay small even for large q_per_kv.
    tq_cands = tuple(c for c in (1024, 512, 256, 128) if q_per_kv * c <= 2048) or (128,)
    tq = _pick_tile(T, tq_cands)
    tk = _pick_tile(T, (512, 256, 128))
    F = q_per_kv * tq

    def kv_index(bg, qi, ki):
        # Clamp fully-masked kv blocks (above the causal diagonal) onto the
        # diagonal block so Pallas re-uses the already-resident block instead
        # of issuing a new HBM DMA.
        diag = (qi * tq + tq - 1) // tk
        return (bg, jnp.minimum(ki, diag), 0)

    kernel = functools.partial(flash_kernel, scale=scale, tq=tq, tk=tk,
                               q_per_kv=q_per_kv, hs=hs)
    return pl.pallas_call(
        kernel,
        out_shape=jax.ShapeDtypeStruct((BG, q_per_kv, T, hs), q.dtype),
        grid=(BG, T // tq, T // tk),
        in_specs=[
            pl.BlockSpec((1, q_per_kv, tq, hs), lambda bg, qi, ki: (bg, 0, qi, 0)),
            pl.BlockSpec((1, tk, hs), kv_index),
            pl.BlockSpec((1, tk, hs), kv_index),
        ],
        out_specs=pl.BlockSpec((1, q_per_kv, tq, hs), lambda bg, qi, ki: (bg, 0, qi, 0)),
        scratch_shapes=[
            pltpu.VMEM((F, 1), jnp.float32),    # running max m
            pltpu.VMEM((F, 1), jnp.float32),    # running denom l
            pltpu.VMEM((F, hs), jnp.float32),   # running weighted sum
        ],
        compiler_params=pltpu.CompilerParams(
            dimension_semantics=("parallel", "parallel", "arbitrary")),
    )(q, k, v)


# --------------------------------------------------------------------------
# Glue: RoPE in (B, T, ...) layout + head plumbing (plain JAX)
# --------------------------------------------------------------------------
def apply_rope_tmajor(x, cos, sin):
    """x: (B, T, ..., n_elem) with time at axis 1; cos/sin: (T, n_elem)."""
    n = x.shape[-1]
    x1 = x[..., : n // 2]
    x2 = x[..., n // 2:]
    rotated = jnp.concatenate([-x2, x1], axis=-1)
    bshape = (1, x.shape[1]) + (1,) * (x.ndim - 3) + (n,)
    return (x * cos.reshape(bshape) + rotated * sin.reshape(bshape)).astype(x.dtype)


def causal_self_attention(x, cos, sin, params, cfg):
    B, T, C = x.shape
    nh, nqg, hs = cfg["n_head"], cfg["n_query_groups"], cfg["head_size"]
    rope_n = cfg["rope_n_elem"]
    q_per_kv = nh // nqg
    total_qkv = q_per_kv + 2
    assert C == cfg["n_embd"]

    # qkv projection (tiled/pipelined Pallas matmul, weight kept in (N, K))
    qkv = linear(x.reshape(B * T, C), params["attn_w"], params["attn_b"])
    qkv = qkv.reshape(B, T, nqg, total_qkv, hs)

    # split in the (B, T, ...) layout; K/V stay un-expanded (one per group)
    q = qkv[:, :, :, :q_per_kv, :]        # (B, T, G, q_per_kv, hs)
    k = qkv[:, :, :, q_per_kv, :]         # (B, T, G, hs)
    v = qkv[:, :, :, q_per_kv + 1, :]     # (B, T, G, hs)

    # RoPE on the first rope_n dims (before any head transpose, un-expanded K)
    q = jnp.concatenate(
        [apply_rope_tmajor(q[..., :rope_n], cos, sin), q[..., rope_n:]], -1)
    k = jnp.concatenate(
        [apply_rope_tmajor(k[..., :rope_n], cos, sin), k[..., rope_n:]], -1)

    # group-major layout with folded query heads: (B*G, q_per_kv, T, hs)
    q = q.transpose(0, 2, 3, 1, 4).reshape(B * nqg, q_per_kv, T, hs)
    k = k.transpose(0, 2, 1, 3).reshape(B * nqg, T, hs)
    v = v.transpose(0, 2, 1, 3).reshape(B * nqg, T, hs)

    y = flash_attention(q, k, v)                     # (B*G, q_per_kv, T, hs)
    y = (y.reshape(B, nqg, q_per_kv, T, hs)
          .transpose(0, 3, 1, 2, 4)                  # (B, T, G, q_per_kv, hs)
          .reshape(B * T, nh * hs))

    out = linear(y, params["proj_w"], params["proj_b"])
    return out.reshape(B, T, C)


# --------------------------------------------------------------------------
# Pure-JAX reference for verification (full-precision matmuls)
# --------------------------------------------------------------------------
def reference_forward(x, cos, sin, params, cfg):
    hi = lax.Precision.HIGHEST
    B, T, C = x.shape
    nh, nqg, hs = cfg["n_head"], cfg["n_query_groups"], cfg["head_size"]
    rope_n = cfg["rope_n_elem"]
    q_per_kv = nh // nqg

    qkv = jnp.dot(x.reshape(B * T, C), params["attn_w"].T, precision=hi) + params["attn_b"]
    qkv = qkv.reshape(B, T, nqg, q_per_kv + 2, hs).transpose(0, 2, 3, 1, 4)
    q = qkv[:, :, :q_per_kv]
    k = qkv[:, :, q_per_kv:q_per_kv + 1]
    v = qkv[:, :, q_per_kv + 1:]
    if nqg != nh:
        k = jnp.broadcast_to(k, (B, nqg, q_per_kv, T, hs))
        v = jnp.broadcast_to(v, (B, nqg, q_per_kv, T, hs))
    q = q.reshape(B, -1, T, hs)
    k = k.reshape(B, -1, T, hs)
    v = v.reshape(B, -1, T, hs)

    def rope(t):
        r = t[..., :rope_n]
        x1, x2 = r[..., :rope_n // 2], r[..., rope_n // 2:]
        rotated = jnp.concatenate([-x2, x1], axis=-1)
        return jnp.concatenate([r * cos + rotated * sin, t[..., rope_n:]], -1)

    q, k = rope(q), rope(k)
    s = jnp.einsum("bhqd,bhkd->bhqk", q, k, precision=hi) / math.sqrt(hs)
    causal = jnp.tril(jnp.ones((T, T), dtype=bool))
    s = jnp.where(causal, s, -jnp.inf)
    p = jax.nn.softmax(s, axis=-1)
    y = jnp.einsum("bhqk,bhkd->bhqd", p, v, precision=hi)
    y = y.transpose(0, 2, 1, 3).reshape(B * T, nh * hs)
    out = jnp.dot(y, params["proj_w"].T, precision=hi) + params["proj_b"]
    return out.reshape(B, T, C)


# --------------------------------------------------------------------------
if __name__ == "__main__":
    cfg = dict(n_embd=32, n_head=4, n_query_groups=2, head_size=8,
               rope_n_elem=int(0.25 * 8))
    B, T = 2, 8
    qkv_out = (cfg["n_head"] + 2 * cfg["n_query_groups"]) * cfg["head_size"]  # 64

    key = jax.random.PRNGKey(0)
    k0, k1, k2, k3, k4 = jax.random.split(key, 5)
    params = {
        "attn_w": 0.05 * jax.random.normal(k0, (qkv_out, cfg["n_embd"]), jnp.float32),
        "attn_b": 0.05 * jax.random.normal(k1, (qkv_out,), jnp.float32),
        "proj_w": 0.05 * jax.random.normal(k2, (cfg["n_embd"],
                                                cfg["head_size"] * cfg["n_head"]),
                                           jnp.float32),
        "proj_b": 0.05 * jax.random.normal(k3, (cfg["n_embd"],), jnp.float32),
    }
    x = jax.random.normal(k4, (B, T, cfg["n_embd"]), jnp.float32)

    # litgpt-style rope cache: (T, rope_n_elem)
    n_elem = cfg["rope_n_elem"]
    theta = 1.0 / (10000.0 ** (jnp.arange(0, n_elem, 2, dtype=jnp.float32) / n_elem))
    idx_theta = jnp.outer(jnp.arange(T, dtype=jnp.float32), theta)
    idx_theta = jnp.concatenate([idx_theta, idx_theta], axis=-1)
    cos, sin = jnp.cos(idx_theta), jnp.sin(idx_theta)

    out = causal_self_attention(x, cos, sin, params, cfg)
    out = jax.block_until_ready(out)

    ref = reference_forward(x, cos, sin, params, cfg)
    assert out.shape == (B, T, cfg["n_embd"])
    max_err = float(jnp.max(jnp.abs(out - ref)))
    assert jnp.allclose(out, ref, rtol=2e-3, atol=2e-4), \
        f"mismatch vs reference (max abs err {max_err})"

    print("KERNEL_OK")
</pallas_src>

<mosaic_0001>
module attributes {stable_mosaic.version = 11 : i64} {
  func.func @linear_kernel(%arg0: i32, %arg1: i32, %arg2: i32, %arg3: memref<16x32xf32, #tpu.memory_space<vmem>>, %arg4: memref<64x32xf32, #tpu.memory_space<vmem>>, %arg5: memref<1x64xf32, #tpu.memory_space<vmem>>, %arg6: memref<16x64xf32, #tpu.memory_space<vmem>>, %arg7: memref<16x64xf32, #tpu.memory_space<vmem>>) attributes {dimension_semantics = [#tpu.dimension_semantics<parallel>, #tpu.dimension_semantics<parallel>, #tpu.dimension_semantics<arbitrary>], iteration_bounds = array<i64: 1, 1, 1>, scalar_prefetch = 0 : i64, scratch_operands = 1 : i64, tpu.core_type = #tpu.core_type<tc>, window_params = [{transform_indices = @transform_0, window_bounds = array<i64: 16, 32>}, {transform_indices = @transform_1, window_bounds = array<i64: 64, 32>}, {transform_indices = @transform_2, window_bounds = array<i64: 1, 64>}, {transform_indices = @transform_3, window_bounds = array<i64: 16, 64>}]} {
    %c0_i32 = arith.constant 0 : i32
    %0 = arith.cmpi eq, %arg2, %c0_i32 : i32
    %1 = arith.extui %0 : i1 to i32
    %c0_i32_0 = arith.constant 0 : i32
    %2 = arith.cmpi ne, %1, %c0_i32_0 : i32
    scf.if %2 {
      %cst_10 = arith.constant 0.000000e+00 : f32
      %12 = vector.broadcast %cst_10 : f32 to vector<16x64xf32>
      %c0_11 = arith.constant 0 : index
      %c0_12 = arith.constant 0 : index
      %13 = vector.load %arg7[%c0_11, %c0_12] : memref<16x64xf32, #tpu.memory_space<vmem>>, vector<16x64xf32>
      tpu.vector_store %arg7[%c0_11, %c0_12], %12 {strides = array<i32>} : memref<16x64xf32, #tpu.memory_space<vmem>>, vector<16x64xf32>,
    } else {
    }
    %c0 = arith.constant 0 : index
    %c0_1 = arith.constant 0 : index
    %3 = vector.load %arg7[%c0, %c0_1] : memref<16x64xf32, #tpu.memory_space<vmem>>, vector<16x64xf32>
    %c0_2 = arith.constant 0 : index
    %c0_3 = arith.constant 0 : index
    %4 = vector.load %arg3[%c0_2, %c0_3] : memref<16x32xf32, #tpu.memory_space<vmem>>, vector<16x32xf32>
    %c0_4 = arith.constant 0 : index
    %c0_5 = arith.constant 0 : index
    %5 = vector.load %arg4[%c0_4, %c0_5] : memref<64x32xf32, #tpu.memory_space<vmem>>, vector<64x32xf32>
    %cst = arith.constant dense<0.000000e+00> : vector<16x64xf32>
    %6 = tpu.matmul %4, %5, %cst {dimension_numbers = #tpu.dot_dimension_numbers<[1], [1], [0], [0], [0, 0, 1, 0], [], []>, precision = #tpu.contract_precision<fp32>} : vector<16x32xf32>, vector<64x32xf32>, vector<16x64xf32> -> vector<16x64xf32>
    %7 = arith.addf %3, %6 : vector<16x64xf32>
    %c0_6 = arith.constant 0 : index
    %c0_7 = arith.constant 0 : index
    %8 = vector.load %arg7[%c0_6, %c0_7] : memref<16x64xf32, #tpu.memory_space<vmem>>, vector<16x64xf32>
    tpu.vector_store %arg7[%c0_6, %c0_7], %7 {strides = array<i32>} : memref<16x64xf32, #tpu.memory_space<vmem>>, vector<16x64xf32>,
    %c0_i32_8 = arith.constant 0 : i32
    %9 = arith.cmpi eq, %arg2, %c0_i32_8 : i32
    %10 = arith.extui %9 : i1 to i32
    %c0_i32_9 = arith.constant 0 : i32
    %11 = arith.cmpi ne, %10, %c0_i32_9 : i32
    scf.if %11 {
      %c0_10 = arith.constant 0 : index
      %c0_11 = arith.constant 0 : index
      %12 = vector.load %arg7[%c0_10, %c0_11] : memref<16x64xf32, #tpu.memory_space<vmem>>, vector<16x64xf32>
      %c0_12 = arith.constant 0 : index
      %c0_13 = arith.constant 0 : index
      %13 = vector.load %arg5[%c0_12, %c0_13] : memref<1x64xf32, #tpu.memory_space<vmem>>, vector<1x64xf32>
      %14 = vector.broadcast %13 : vector<1x64xf32> to vector<16x64xf32>
      %15 = arith.addf %12, %14 : vector<16x64xf32>
      %c0_14 = arith.constant 0 : index
      %c0_15 = arith.constant 0 : index
      %16 = vector.load %arg6[%c0_14, %c0_15] : memref<16x64xf32, #tpu.memory_space<vmem>>, vector<16x64xf32>
      tpu.vector_store %arg6[%c0_14, %c0_15], %15 {strides = array<i32>} : memref<16x64xf32, #tpu.memory_space<vmem>>, vector<16x64xf32>,
    } else {
    }
    return
  }
  func.func @transform_0(%arg0: i32, %arg1: i32, %arg2: i32) -> (i32, i32) {
    %c0_i32 = arith.constant 0 : i32
    return %arg0, %arg2 : i32, i32
  }
  func.func @transform_1(%arg0: i32, %arg1: i32, %arg2: i32) -> (i32, i32) {
    %c0_i32 = arith.constant 0 : i32
    return %arg1, %arg2 : i32, i32
  }
  func.func @transform_2(%arg0: i32, %arg1: i32, %arg2: i32) -> (i32, i32) {
    %c0_i32 = arith.constant 0 : i32
    %c0_i32_0 = arith.constant 0 : i32
    return %c0_i32, %arg1 : i32, i32
  }
  func.func @transform_3(%arg0: i32, %arg1: i32, %arg2: i32) -> (i32, i32) {
    %c0_i32 = arith.constant 0 : i32
    return %arg0, %arg1 : i32, i32
  }
}

</mosaic_0001>

<bundles_post_ra>
// kernel: tpu_custom_call.1
= control target key start
LH: loop header
LB: loop body
LE: loop exit
PB: predicated region body
PF: predicated region fallthrough
CT: control target
= control target key end

     0   :  { %vm34_vm0 = vcmask 261120   ;;  %s590_s0 = inlined_call_operand.vmem [shape: f32[16,32], index: 0, kind: input, shape index: {}]   ;;  %s591_s1 = inlined_call_operand.vmem [shape: f32[64,32], index: 1, kind: input, shape index: {}]   ;;  %s592_s2 = inlined_call_operand.vmem [shape: f32[1,64], index: 2, kind: input, shape index: {}]   ;;  %s593_s3 = inlined_call_operand.hbm [shape: f32[16,64], index: 3, kind: output, shape index: {}]  }
   0x1   :  { %v33_v0 = vld [vmem:[%s591_s1 + $0x38] sm:$0xff]  ;;  %v32_v1 = vld [vmem:[%s591_s1 + $0x30] sm:$0xff]  ;;  %v31_v2 = vld [vmem:[%s591_s1 + $0x28] sm:$0xff] }
   0x2   :  { %v63_v3 = vsel %vm34_vm0, %v33_v0, 0  ;;  %v60_v4 = vsel %vm34_vm0, %v32_v1, 0  ;;  %v57_v5 = vsel %vm34_vm0, %v31_v2, 0  ;;  %v30_v6 = vld [vmem:[%s591_s1 + $0x20] sm:$0xff]  ;;  %v29_v7 = vld [vmem:[%s591_s1 + $0x18] sm:$0xff] }
   0x3   :  { %v458_v8 = vand.u32 4294901760, %v63_v3  ;;  %v460_v9 = vand.u32 4294901760, %v60_v4  ;;  %v462_v10 = vand.u32 4294901760, %v57_v5  ;;  %v54_v11 = vsel %vm34_vm0, %v30_v6, 0 }
   0x4   :  { %v465_v12 = vand.u32 4294901760, %v54_v11 }
   0x5   :  { %8 = vsyncpa [#allocation4], 0  ;;  %74 = vmatpush.xpose.msra.mxu0 %v458_v8  ;;  %v115_v13 = vsub.f32 %v63_v3, %v458_v8  ;;  %223 = vmatpush.xpose.msra.mxu3 %v458_v8  ;;  %v121_v14 = vsub.f32 %v60_v4, %v460_v9  ;;  %v127_v15 = vsub.f32 %v57_v5, %v462_v10  ;;  %v51_v16 = vsel %vm34_vm0, %v29_v7, 0  ;;  %v28_v17 = vld [vmem:[%s591_s1 + $0x10] sm:$0xff]  ;;  %v27_v26 = vld [vmem:[%s591_s1 + $0x8] sm:$0xff]  ;;  %s417_s5 = smov [#allocation3]  }
   0x6   :  { %v480_v20 = vand.u32 4294901760, %v51_v16  ;;  %v48_v21 = vsel %vm34_vm0, %v28_v17, 0  ;;  %v133_v24 = vsub.f32 %v54_v11, %v465_v12  ;;  %v24_v27 = vld [vmem:[%s590_s0] sm:$0xff]  ;;  %v45_v31 = vsel %vm34_vm0, %v27_v26, 0  ;;  %v25_v44 = vld [vmem:[%s590_s0 + $0x8] sm:$0xff]  ;;  %s355_s6 = sshll.u32 %s417_s5, 4  ;;  %s356_s6 = int_to_ptr.vmem [resolvable:$true] %s355_s6 }
   0x7   :  { %181 = vmatpush.xpose.msra.mxu2 %v115_v13  ;;  %v476_v18 = vand.u32 4294901760, %v115_v13  ;;  %v478_v19 = vand.u32 4294901760, %v121_v14  ;;  %v488_v25 = vand.u32 4294901760, %v127_v15  ;;  %v497_v30 = vand.u32 4294901760, %v48_v21  ;;  %v26_v35 = vld [vmem:[%s591_s1] sm:$0xff]  ;;  %s357_s9 = sshll.u32 %s593_s3, 4  ;;  %s358_s9 = int_to_ptr.hbm [resolvable:$true] %s357_s9 }
   0x8   :  { %v139_v29 = vsub.f32 %v51_v16, %v480_v20  ;;  %v502_v34 = vand.u32 4294901760, %v133_v24  ;;  %v36_v36 = vsel %vm34_vm0, %v24_v27, 0  ;;  %v509_v37 = vand.u32 4294901760, %v45_v31  ;;  %s418_s10 = smov 128   ;;  %s419_s11 = smov 8  }
   0x9   :  { %76 = vmatpush.xpose.msra.mxu0 %v460_v9  ;;  %v117_v22 = vsub.f32 %v115_v13, %v476_v18  ;;  %225 = vmatpush.xpose.msra.mxu3 %v460_v9  ;;  %v123_v23 = vsub.f32 %v121_v14, %v478_v19  ;;  %v129_v33 = vsub.f32 %v127_v15, %v488_v25  ;;  %v42_v38 = vsel %vm34_vm0, %v26_v35, 0 }
   0xa   :  { %v512_v39 = vand.u32 4294901760, %v36_v36  ;;  %v135_v41 = vsub.f32 %v133_v24, %v502_v34  ;;  %v145_v42 = vsub.f32 %v48_v21, %v497_v30  ;;  %v517_v43 = vand.u32 4294901760, %v139_v29 }
   0xb   :  { %184 = vmatpush.xpose.msra.mxu2 %v121_v14  ;;  %v118_v28 = vand.u32 4294901760, %v117_v22  ;;  %v124_v32 = vand.u32 4294901760, %v123_v23  ;;  %v130_v40 = vand.u32 4294901760, %v129_v33  ;;  %v523_v45 = vand.u32 4294901760, %v42_v38  ;;  %v389_v33 = vld [vmem:[%s592_s2] ss:$0 sm:$0xff] }
   0xc   :  { %v90_v46 = vsub.f32 %v36_v36, %v512_v39  ;;  %v136_v47 = vand.u32 4294901760, %v135_v41  ;;  %v141_v48 = vsub.f32 %v139_v29, %v517_v43  ;;  %v151_v49 = vsub.f32 %v45_v31, %v509_v37 }
   0xd   :  { %78 = vmatpush.xpose.msra.mxu0 %v462_v10  ;;  %119 = vmatpush.xpose.msra.mxu1 %v118_v28  ;;  %v529_v50 = vand.u32 4294901760, %v145_v42  ;;  %v39_v51 = vsel %vm34_vm0, %v25_v44, 0  ;;  %v157_v52 = vsub.f32 %v42_v38, %v523_v45  ;;  %vm19_vm1 = vcmask 523264  }
   0xe   :  { %227 = vmatpush.xpose.msra.mxu3 %v462_v10  ;;  %v91_v53 = vand.u32 4294901760, %v90_v46  ;;  %v142_v54 = vand.u32 4294901760, %v141_v48  ;;  %v152_v56 = vand.u32 4294901760, %v151_v49  ;;  %v536_v57 = vand.u32 4294901760, %v39_v51 }
   0xf   :  { %187 = vmatpush.xpose.msra.mxu2 %v127_v15  ;;  %v147_v55 = vsub.f32 %v145_v42, %v529_v50  ;;  %v158_v61 = vand.u32 4294901760, %v157_v52  ;;  %v416_v6 = vmov 0.0  }
  0x10   :  { %v92_v58 = vsub.f32 %v90_v46, %v91_v53  ;;  %v153_v60 = vsub.f32 %v151_v49, %v152_v56  ;;  %v98_v62 = vsub.f32 %v39_v51, %v536_v57  ;;  %20 = vst.msk [vmem:[#allocation2] sm:$0xff] %vm19_vm1, %v416_v6 }
  0x11   :  { %80 = vmatpush.xpose.msra.mxu0 %v465_v12  ;;  %125 = vmatpush.xpose.msra.mxu1 %v124_v32  ;;  %v148_v59 = vand.u32 4294901760, %v147_v55  ;;  %v159_v1 = vsub.f32 %v157_v52, %v158_v61  ;;  %21 = vst.msk [vmem:[#allocation2 + $0x8] sm:$0xff] %vm19_vm1, %v416_v6 }
  0x12   :  { %229 = vmatpush.xpose.msra.mxu3 %v465_v12  ;;  %v93_v63 = vand.u32 4294901760, %v92_v58  ;;  %v154_v0 = vand.u32 4294901760, %v153_v60  ;;  %v99_v2 = vand.u32 4294901760, %v98_v62 }
  0x13   :  { %190 = vmatpush.xpose.msra.mxu2 %v133_v24  ;;  %v160_v3 = vand.u32 4294901760, %v159_v1 }
  0x14   :  { %v100_v4 = vsub.f32 %v98_v62, %v99_v2 }
  0x15   :  { %82 = vmatpush.xpose.msra.mxu0 %v480_v20  ;;  %131 = vmatpush.xpose.msra.mxu1 %v130_v40 }
  0x16   :  { %231 = vmatpush.xpose.msra.mxu3 %v480_v20  ;;  %v101_v5 = vand.u32 4294901760, %v100_v4 }
  0x17   :  { %193 = vmatpush.xpose.msra.mxu2 %v139_v29 }
  0x18   :  { %v23_v29 = vld [vmem:[#allocation2 + $0x8] sm:$0xff] }
  0x19   :  { %84 = vmatpush.xpose.msra.mxu0 %v497_v30  ;;  %137 = vmatpush.xpose.msra.mxu1 %v136_v47 }
  0x1a   :  { %233 = vmatpush.xpose.msra.mxu3 %v497_v30 }
  0x1b   :  { %196 = vmatpush.xpose.msra.mxu2 %v145_v42 }
  0x1d   :  { %86 = vmatpush.xpose.msra.mxu0 %v509_v37  ;;  %143 = vmatpush.xpose.msra.mxu1 %v142_v54 }
  0x1e   :  { %235 = vmatpush.xpose.msra.mxu3 %v509_v37 }
  0x1f   :  { %199 = vmatpush.xpose.msra.mxu2 %v151_v49 }
  0x21   :  { %88 = vmatpush.xpose.msra.mxu0 %v523_v45  ;;  %149 = vmatpush.xpose.msra.mxu1 %v148_v59 }
  0x22   :  { %237 = vmatpush.xpose.msra.mxu3 %v523_v45 }
  0x23   :  { %202 = vmatpush.xpose.msra.mxu2 %v157_v52 }
  0x24   :  { %94 = vmatmul.f32.vlgmr.msra.gmra.mxu0 %v93_v63 }
  0x25   :  { %262 = vmatpush.xpose.msrb.mxu0 %v476_v18  ;;  %155 = vmatpush.xpose.msra.mxu1 %v154_v0 }
  0x26   :  { %377 = vmatpush.xpose.msrb.mxu3 %v458_v8  ;;  %205 = vmatmul.f32.vlgmr.msra.gmra.mxu2 %v90_v46 }
  0x27   :  { %369 = vmatpush.xpose.msrb.mxu2 %v476_v18  ;;  %241 = vmatmul.f32.vlgmr.msra.gmra.mxu3 %v91_v53 }
  0x29   :  { %266 = vmatpush.xpose.msrb.mxu0 %v478_v19  ;;  %161 = vmatpush.xpose.msra.mxu1 %v160_v3 }
  0x2a   :  { %378 = vmatpush.xpose.msrb.mxu3 %v460_v9 }
  0x2b   :  { %370 = vmatpush.xpose.msrb.mxu2 %v478_v19 }
  0x2c   :  { %163 = vmatmul.f32.vlgmr.msra.gmra.mxu1 %v512_v39  ;;  %102 = vmatmul.f32.gmra.mxu0 %v101_v5 }
  0x2d   :  { %270 = vmatpush.xpose.msrb.mxu0 %v488_v25  ;;  %309 = vmatpush.xpose.msrb.mxu1 %v458_v8 }
  0x2e   :  { %379 = vmatpush.xpose.msrb.mxu3 %v462_v10  ;;  %210 = vmatmul.f32.gmra.mxu2 %v98_v62 }
  0x2f   :  { %371 = vmatpush.xpose.msrb.mxu2 %v488_v25  ;;  %247 = vmatmul.f32.gmra.mxu3 %v99_v2  ;;  %v22_v25 = vld [vmem:[#allocation2] sm:$0xff] }
  0x31   :  { %274 = vmatpush.xpose.msrb.mxu0 %v502_v34  ;;  %311 = vmatpush.xpose.msrb.mxu1 %v460_v9 }
  0x32   :  { %380 = vmatpush.xpose.msrb.mxu3 %v465_v12 }
  0x33   :  { %372 = vmatpush.xpose.msrb.mxu2 %v502_v34 }
  0x34   :  { %167 = vmatmul.f32.gmra.mxu1 %v536_v57 }
  0x35   :  { %278 = vmatpush.xpose.msrb.mxu0 %v517_v43  ;;  %313 = vmatpush.xpose.msrb.mxu1 %v462_v10 }
  0x36   :  { %381 = vmatpush.xpose.msrb.mxu3 %v480_v20 }
  0x37   :  { %373 = vmatpush.xpose.msrb.mxu2 %v517_v43 }
  0x39   :  { %282 = vmatpush.xpose.msrb.mxu0 %v529_v50  ;;  %315 = vmatpush.xpose.msrb.mxu1 %v465_v12 }
  0x3a   :  { %382 = vmatpush.xpose.msrb.mxu3 %v497_v30 }
  0x3b   :  { %374 = vmatpush.xpose.msrb.mxu2 %v529_v50 }
  0x3d   :  { %286 = vmatpush.xpose.msrb.mxu0 %v152_v56  ;;  %317 = vmatpush.xpose.msrb.mxu1 %v480_v20 }
  0x3e   :  { %383 = vmatpush.xpose.msrb.mxu3 %v509_v37 }
  0x3f   :  { %375 = vmatpush.xpose.msrb.mxu2 %v152_v56 }
  0x41   :  { %290 = vmatpush.xpose.msrb.mxu0 %v158_v61  ;;  %319 = vmatpush.xpose.msrb.mxu1 %v497_v30 }
  0x42   :  { %384 = vmatpush.xpose.msrb.mxu3 %v523_v45 }
  0x43   :  { %376 = vmatpush.xpose.msrb.mxu2 %v158_v61 }
  0x44   :  { %292 = vmatmul.f32.vlgmr.msrb.gmra.mxu0 %v512_v39 }
  0x45   :  { %321 = vmatpush.xpose.msrb.mxu1 %v509_v37  ;;  %329 = vmatmul.f32.vlgmr.msrb.gmra.mxu3 %v536_v57 }
  0x46   :  { %296 = vmatmul.f32.vlgmr.msrb.gmra.mxu2 %v536_v57 }
  0x49   :  { %323 = vmatpush.xpose.msrb.mxu1 %v523_v45 }
  0x4c   :  { %325 = vmatmul.f32.vlgmr.msrb.gmra.mxu1 %v512_v39 }
  0xa1   :  { %v95_v7 = vpop.f32.mrf.mxu0 }
  0xa9   :  { %v164_v8 = vpop.f32.mrf.mxu1  ;;  %v206_v10 = vpop.f32.mrf.mxu2 }
  0xaa   :  { %v242_v9 = vpop.f32.mrf.mxu3  ;;  %v103_v11 = vpop.f32.mrf.mxu0  ;;  %v165_v13 = vadd.f32 %v164_v8, %v95_v7 }
  0xac   :  { %v207_v17 = vadd.f32 %v206_v10, %v165_v13 }
  0xae   :  { %v243_v20 = vadd.f32 %v242_v9, %v207_v17 }
  0xb1   :  { %v168_v12 = vpop.f32.mrf.mxu1  ;;  %v211_v15 = vpop.f32.mrf.mxu2 }
  0xb2   :  { %v248_v14 = vpop.f32.mrf.mxu3  ;;  %v169_v16 = vadd.f32 %v168_v12, %v103_v11 }
  0xb4   :  { %v212_v18 = vadd.f32 %v211_v15, %v169_v16 }
  0xb6   :  { %v249_v22 = vadd.f32 %v248_v14, %v212_v18 }
  0xc1   :  { %v293_v19 = vpop.f32.mrf.mxu0 }
  0xc2   :  { %v294_v21 = vadd.f32 %v293_v19, %v243_v20 }
  0xc8   :  { %v330_v23 = vpop.f32.mrf.mxu3 }
  0xc9   :  { %v297_v24 = vpop.f32.mrf.mxu2  ;;  %v326_v26 = vpop.f32.mrf.mxu1 }
  0xca   :  { %v298_v27 = vadd.f32 %v297_v24, %v249_v22  ;;  %v327_v28 = vadd.f32 %v326_v26, %v294_v21 }
  0xcc   :  { %v333_v30 = vadd.f32 %v327_v28, %v22_v25  ;;  %v331_v31 = vadd.f32 %v330_v23, %v298_v27 }
  0xce   :  { %336 = vst.msk [vmem:[#allocation2] sm:$0xff] %vm19_vm1, %v333_v30  ;;  %v334_v32 = vadd.f32 %v331_v31, %v23_v29 }
  0xd0   :  { %337 = vst.msk [vmem:[#allocation2 + $0x8] sm:$0xff] %vm19_vm1, %v334_v32 }
  0xd5   :  { %v341_v34 = vld [vmem:[#allocation2] sm:$0xff] }
  0xd6   :  { %v347_v35 = vadd.f32 %v389_v33, %v341_v34 }
  0xd7   :  { %v342_v36 = vld [vmem:[#allocation2 + $0x8] sm:$0xff] }
  0xd8   :  { %v348_v37 = vadd.f32 %v389_v33, %v342_v36  ;;  %349 = vst.msk [vmem:[#allocation3] sm:$0xff] %vm19_vm1, %v347_v35 }
  0xda   :  { %350 = vst.msk [vmem:[#allocation3 + $0x8] sm:$0xff] %vm19_vm1, %v348_v37 }
  0xdb   :  { %363 = dma.vmem_to_hbm [thread:$0]  %s356_s6, 256, %s358_s9, [#allocation4], %s418_s10, %s418_s10, %s419_s11  }
  0xdc   :  { %414 = dma.done.wait [#allocation4], 256  }
  0xdd   :  { %415 = vsyncadd [#allocation4], 4294967040 }
  0xde   :  { %368 = vsyncpa [#allocation4], 1 }

</bundles_post_ra>
